<compile_context>
chip_gen: v7x
topology: tpu7x:2x2x1
jax: 0.10.0
libtpu: 0.0.40
codegen_flags: <defaults>
</compile_context>

<pallas_src>
import jax
import jax.numpy as jnp
from jax.experimental import pallas as pl
from jax.experimental.pallas import tpu as pltpu

NUM_CLASSES = 3
OUT_LANES = 8        # softmax head width (classes padded 3 -> 8; narrow lane-dense output)
HID_LANES = 128      # hidden feature dims padded to multiples of the 128-lane width
_NEG_LOGIT = -1e30   # f32 bias on padded class lanes -> exp() underflows to exactly 0


def _round_up(n, m):
    return ((n + m - 1) // m) * m


# ------------------------------- kernel -----------------------------------

def _mlp_kernel(x_ref,
                w1_ref, b1_ref,
                w2_ref, b2_ref,
                w3_ref, b3_ref,
                w4_ref, b4_ref,
                out_ref):
    cdt = w1_ref.dtype  # matmul dtype (bf16 by default); accum / bias / softmax stay f32

    def hidden(a, w_ref, b_ref):
        # BatchNorm (running stats) folded into w/b at build time; Dropout = identity (eval).
        y = jnp.dot(a, w_ref[...], preferred_element_type=jnp.float32) + b_ref[...]
        return jnp.maximum(y, 0.0).astype(cdt)

    h = hidden(x_ref[...].astype(cdt), w1_ref, b1_ref)
    h = hidden(h, w2_ref, b2_ref)
    h = hidden(h, w3_ref, b3_ref)

    # Head: Linear(h3 -> OUT_LANES) + Softmax.  Padded class lanes have zero weight
    # columns and a -1e30 f32 bias, so exp() underflows to exactly 0 there and they
    # drop out of the normalization sum.
    logits = jnp.dot(h, w4_ref[...], preferred_element_type=jnp.float32) + b4_ref[...]
    m = jnp.max(logits, axis=-1, keepdims=True)
    e = jnp.exp(logits - m)
    out_ref[...] = e / jnp.sum(e, axis=-1, keepdims=True)  # exact normalization


# ------------------------------- wrapper -----------------------------------

def serie_a_mlp_forward(x, params, *, block_batch=2048, compute_dtype=jnp.bfloat16):
    """Forward pass. x: (B, input_size) float32. params: make_params()[0].

    Eval semantics only: BatchNorm1d uses running statistics (pre-folded into the
    Linear layers) and Dropout is identity.
    """
    B, F = x.shape
    assert params["w1"].shape[0] == F, "input_size mismatch with params"
    out_lanes = params["w4"].shape[1]

    # Batch tiling: large tiles amortize the ~0.35us/step pipeline overhead, but for
    # B >= 256 keep at least 2 grid steps so v7x's two TensorCores both get work.
    steps = max(1, pl.cdiv(B, block_batch))
    if B >= 256:
        steps = max(steps, 2)
    tb = _round_up(pl.cdiv(B, steps), 16)      # sublane-legal for f32 and bf16 blocks
    Bp = _round_up(B, tb)
    xb = x if Bp == B else jnp.pad(x, ((0, Bp - B), (0, 0)))

    # Weights in the matmul dtype; biases (incl. the -1e30 class mask) stay f32.
    w1 = params["w1"].astype(compute_dtype)
    w2 = params["w2"].astype(compute_dtype)
    w3 = params["w3"].astype(compute_dtype)
    w4 = params["w4"].astype(compute_dtype)
    b1, b2, b3, b4 = params["b1"], params["b2"], params["b3"], params["b4"]

    def const2d(a):  # weights/biases: constant index_map -> VMEM-resident across steps
        return pl.BlockSpec(a.shape, lambda i: (0, 0))

    out = pl.pallas_call(
        _mlp_kernel,
        out_shape=jax.ShapeDtypeStruct((Bp, out_lanes), jnp.float32),
        grid_spec=pltpu.PrefetchScalarGridSpec(
            num_scalar_prefetch=0,
            grid=(Bp // tb,),
            in_specs=[pl.BlockSpec((tb, F), lambda i: (i, 0)),   # un-padded input tile
                      const2d(w1), const2d(b1),
                      const2d(w2), const2d(b2),
                      const2d(w3), const2d(b3),
                      const2d(w4), const2d(b4)],
            out_specs=pl.BlockSpec((tb, out_lanes), lambda i: (i, 0))),
        compiler_params=pltpu.CompilerParams(
            dimension_semantics=("parallel",)),
    )(xb, w1, b1, w2, b2, w3, b3, w4, b4)

    return out[:B, :NUM_CLASSES]


# ------------------------- parameter construction -------------------------

def _linear_init(key, fan_in, fan_out):
    """PyTorch-style uniform(-1/sqrt(fan_in), 1/sqrt(fan_in)); weight stored (in, out)."""
    kw, kb = jax.random.split(key)
    bound = 1.0 / jnp.sqrt(float(fan_in))
    w = jax.random.uniform(kw, (fan_in, fan_out), jnp.float32, -bound, bound)
    b = jax.random.uniform(kb, (fan_out,), jnp.float32, -bound, bound)
    return w, b


def _bn_params(key, n):
    """Deterministic, non-trivial BatchNorm1d parameters + running statistics."""
    kg, kb, km, kv = jax.random.split(key, 4)
    gamma = 1.0 + 0.1 * jax.random.normal(kg, (n,), jnp.float32)
    beta = 0.1 * jax.random.normal(kb, (n,), jnp.float32)
    rm = 0.1 * jax.random.normal(km, (n,), jnp.float32)
    rv = 1.0 + 0.1 * jnp.abs(jax.random.normal(kv, (n,), jnp.float32))
    return gamma, beta, rm, rv


def _pad_wb(w, b, pad_in, pad_out, pad_bias_value=0.0):
    fi, fo = w.shape
    wp = jnp.zeros((pad_in, pad_out), jnp.float32).at[:fi, :fo].set(w)
    bp = jnp.full((1, pad_out), pad_bias_value, jnp.float32).at[0, :fo].set(b)
    return wp, bp


def make_params(input_size, hidden_size, key, eps=1e-5):
    """Returns (kernel_params, raw_params).

    kernel_params: BN folded into Linear; w1 (input_size, h1_pad), hidden weights
                   padded to 128-lane multiples, head weight (h3_pad, OUT_LANES)
                   with -1e30 bias on the padded class lanes.
    raw_params:    unfolded/unpadded params matching the PyTorch module exactly.
    """
    h1, h2, h3 = hidden_size, hidden_size // 2, hidden_size // 4
    dims = [(input_size, h1), (h1, h2), (h2, h3), (h3, NUM_CLASSES)]
    pad_in = [input_size, _round_up(h1, HID_LANES), _round_up(h2, HID_LANES),
              _round_up(h3, HID_LANES)]
    pad_out = [_round_up(h1, HID_LANES), _round_up(h2, HID_LANES),
               _round_up(h3, HID_LANES), OUT_LANES]
    keys = jax.random.split(key, 7)

    raw = {"eps": eps}
    kernel = {}
    ki = 0
    for layer in range(1, 4):  # Linear + BatchNorm1d + ReLU (+ Dropout, identity in eval)
        fan_in, fan_out = dims[layer - 1]
        w, b = _linear_init(keys[ki], fan_in, fan_out); ki += 1
        g, be, rm, rv = _bn_params(keys[ki], fan_out); ki += 1
        raw[f"w{layer}"], raw[f"b{layer}"] = w, b
        raw[f"g{layer}"], raw[f"be{layer}"] = g, be
        raw[f"rm{layer}"], raw[f"rv{layer}"] = rm, rv
        scale = g / jnp.sqrt(rv + eps)          # fold BN(running stats) into the Linear
        shift = be - rm * scale
        wf = w * scale[None, :]
        bf = b * scale + shift
        wp, bp = _pad_wb(wf, bf, pad_in[layer - 1], pad_out[layer - 1])
        kernel[f"w{layer}"], kernel[f"b{layer}"] = wp, bp

    # Output head: Linear(h3 -> 3); padded class lanes get a -1e30 f32 bias.
    fan_in, fan_out = dims[3]
    w, b = _linear_init(keys[ki], fan_in, fan_out)
    raw["w4"], raw["b4"] = w, b
    wp, bp = _pad_wb(w, b, pad_in[3], pad_out[3], pad_bias_value=_NEG_LOGIT)
    kernel["w4"], kernel["b4"] = wp, bp
    return kernel, raw


def _reference(x, raw):
    """Pure-JAX reference with the original (unfolded) op order of the PyTorch module."""
    eps = raw["eps"]
    h = x
    for layer in range(1, 4):
        h = h @ raw[f"w{layer}"] + raw[f"b{layer}"]
        h = (h - raw[f"rm{layer}"]) / jnp.sqrt(raw[f"rv{layer}"] + eps)
        h = h * raw[f"g{layer}"] + raw[f"be{layer}"]
        h = jnp.maximum(h, 0.0)
    logits = h @ raw["w4"] + raw["b4"]
    return jax.nn.softmax(logits, axis=1)


if __name__ == "__main__":
    INPUT_SIZE = 16
    HIDDEN_SIZE = 32
    BATCH = 8

    key = jax.random.PRNGKey(0)
    kx, kp = jax.random.split(key)
    x = jax.random.normal(kx, (BATCH, INPUT_SIZE), jnp.float32)
    kernel_params, raw_params = make_params(INPUT_SIZE, HIDDEN_SIZE, kp)

    ref = _reference(x, raw_params)

    # Default path: bf16 matmuls (recommended on v5e/v6e/v7x), f32 accumulation.
    out_bf16 = jax.block_until_ready(serie_a_mlp_forward(x, kernel_params))
    assert out_bf16.shape == (BATCH, NUM_CLASSES)
    assert jnp.allclose(out_bf16, ref, atol=5e-2), "bf16 path mismatch vs reference"
    assert jnp.allclose(jnp.sum(out_bf16, axis=1), jnp.ones(BATCH), atol=1e-3)

    # f32 matmul path: tight tolerance (softmax is exactly normalized in-kernel).
    out_f32 = jax.block_until_ready(
        serie_a_mlp_forward(x, kernel_params, compute_dtype=jnp.float32))
    assert out_f32.shape == (BATCH, NUM_CLASSES)
    assert jnp.allclose(out_f32, ref, atol=2e-3, rtol=2e-3), "f32 path mismatch vs reference"
    assert jnp.allclose(jnp.sum(out_f32, axis=1), jnp.ones(BATCH), atol=1e-3)

    print("KERNEL_OK")
</pallas_src>

<mosaic_0001>
module attributes {stable_mosaic.version = 11 : i64} {
  func.func @_mlp_kernel(%arg0: i32, %arg1: memref<16x16xf32, #tpu.memory_space<vmem>>, %arg2: memref<16x128xbf16, #tpu.memory_space<vmem>>, %arg3: memref<1x128xf32, #tpu.memory_space<vmem>>, %arg4: memref<128x128xbf16, #tpu.memory_space<vmem>>, %arg5: memref<1x128xf32, #tpu.memory_space<vmem>>, %arg6: memref<128x128xbf16, #tpu.memory_space<vmem>>, %arg7: memref<1x128xf32, #tpu.memory_space<vmem>>, %arg8: memref<128x8xbf16, #tpu.memory_space<vmem>>, %arg9: memref<1x8xf32, #tpu.memory_space<vmem>>, %arg10: memref<16x8xf32, #tpu.memory_space<vmem>>) attributes {dimension_semantics = [#tpu.dimension_semantics<parallel>], iteration_bounds = array<i64: 1>, scalar_prefetch = 0 : i64, scratch_operands = 0 : i64, tpu.core_type = #tpu.core_type<tc>, window_params = [{transform_indices = @transform_0, window_bounds = array<i64: 16, 16>}, {pipeline_mode = #tpu.pipeline_mode<synchronous>, transform_indices = @transform_1, window_bounds = array<i64: 16, 128>}, {pipeline_mode = #tpu.pipeline_mode<synchronous>, transform_indices = @transform_2, window_bounds = array<i64: 1, 128>}, {pipeline_mode = #tpu.pipeline_mode<synchronous>, transform_indices = @transform_3, window_bounds = array<i64: 128, 128>}, {pipeline_mode = #tpu.pipeline_mode<synchronous>, transform_indices = @transform_4, window_bounds = array<i64: 1, 128>}, {pipeline_mode = #tpu.pipeline_mode<synchronous>, transform_indices = @transform_5, window_bounds = array<i64: 128, 128>}, {pipeline_mode = #tpu.pipeline_mode<synchronous>, transform_indices = @transform_6, window_bounds = array<i64: 1, 128>}, {pipeline_mode = #tpu.pipeline_mode<synchronous>, transform_indices = @transform_7, window_bounds = array<i64: 128, 8>}, {pipeline_mode = #tpu.pipeline_mode<synchronous>, transform_indices = @transform_8, window_bounds = array<i64: 1, 8>}, {transform_indices = @transform_9, window_bounds = array<i64: 16, 8>}]} {
    %c0 = arith.constant 0 : index
    %c0_0 = arith.constant 0 : index
    %0 = vector.load %arg1[%c0, %c0_0] : memref<16x16xf32, #tpu.memory_space<vmem>>, vector<16x16xf32>
    %1 = arith.truncf %0 : vector<16x16xf32> to vector<16x16xbf16>
    %c0_1 = arith.constant 0 : index
    %c0_2 = arith.constant 0 : index
    %2 = vector.load %arg2[%c0_1, %c0_2] : memref<16x128xbf16, #tpu.memory_space<vmem>>, vector<16x128xbf16>
    %cst = arith.constant dense<0.000000e+00> : vector<16x128xf32>
    %3 = tpu.matmul %1, %2, %cst {dimension_numbers = #tpu.dot_dimension_numbers<[1], [0], [0], [1], [0, 0, 1, 1], [], []>} : vector<16x16xbf16>, vector<16x128xbf16>, vector<16x128xf32> -> vector<16x128xf32>
    %c0_3 = arith.constant 0 : index
    %c0_4 = arith.constant 0 : index
    %4 = vector.load %arg3[%c0_3, %c0_4] : memref<1x128xf32, #tpu.memory_space<vmem>>, vector<1x128xf32>
    %5 = vector.broadcast %4 : vector<1x128xf32> to vector<16x128xf32>
    %6 = arith.addf %3, %5 : vector<16x128xf32>
    %cst_5 = arith.constant 0.000000e+00 : f32
    %7 = vector.broadcast %cst_5 : f32 to vector<16x128xf32>
    %8 = arith.maximumf %6, %7 : vector<16x128xf32>
    %9 = arith.truncf %8 : vector<16x128xf32> to vector<16x128xbf16>
    %c0_6 = arith.constant 0 : index
    %c0_7 = arith.constant 0 : index
    %10 = vector.load %arg4[%c0_6, %c0_7] : memref<128x128xbf16, #tpu.memory_space<vmem>>, vector<128x128xbf16>
    %cst_8 = arith.constant dense<0.000000e+00> : vector<16x128xf32>
    %11 = tpu.matmul %9, %10, %cst_8 {dimension_numbers = #tpu.dot_dimension_numbers<[1], [0], [0], [1], [0, 0, 1, 1], [], []>} : vector<16x128xbf16>, vector<128x128xbf16>, vector<16x128xf32> -> vector<16x128xf32>
    %c0_9 = arith.constant 0 : index
    %c0_10 = arith.constant 0 : index
    %12 = vector.load %arg5[%c0_9, %c0_10] : memref<1x128xf32, #tpu.memory_space<vmem>>, vector<1x128xf32>
    %13 = vector.broadcast %12 : vector<1x128xf32> to vector<16x128xf32>
    %14 = arith.addf %11, %13 : vector<16x128xf32>
    %cst_11 = arith.constant 0.000000e+00 : f32
    %15 = vector.broadcast %cst_11 : f32 to vector<16x128xf32>
    %16 = arith.maximumf %14, %15 : vector<16x128xf32>
    %17 = arith.truncf %16 : vector<16x128xf32> to vector<16x128xbf16>
    %c0_12 = arith.constant 0 : index
    %c0_13 = arith.constant 0 : index
    %18 = vector.load %arg6[%c0_12, %c0_13] : memref<128x128xbf16, #tpu.memory_space<vmem>>, vector<128x128xbf16>
    %cst_14 = arith.constant dense<0.000000e+00> : vector<16x128xf32>
    %19 = tpu.matmul %17, %18, %cst_14 {dimension_numbers = #tpu.dot_dimension_numbers<[1], [0], [0], [1], [0, 0, 1, 1], [], []>} : vector<16x128xbf16>, vector<128x128xbf16>, vector<16x128xf32> -> vector<16x128xf32>
    %c0_15 = arith.constant 0 : index
    %c0_16 = arith.constant 0 : index
    %20 = vector.load %arg7[%c0_15, %c0_16] : memref<1x128xf32, #tpu.memory_space<vmem>>, vector<1x128xf32>
    %21 = vector.broadcast %20 : vector<1x128xf32> to vector<16x128xf32>
    %22 = arith.addf %19, %21 : vector<16x128xf32>
    %cst_17 = arith.constant 0.000000e+00 : f32
    %23 = vector.broadcast %cst_17 : f32 to vector<16x128xf32>
    %24 = arith.maximumf %22, %23 : vector<16x128xf32>
    %25 = arith.truncf %24 : vector<16x128xf32> to vector<16x128xbf16>
    %c0_18 = arith.constant 0 : index
    %c0_19 = arith.constant 0 : index
    %26 = vector.load %arg8[%c0_18, %c0_19] : memref<128x8xbf16, #tpu.memory_space<vmem>>, vector<128x8xbf16>
    %cst_20 = arith.constant dense<0.000000e+00> : vector<16x8xf32>
    %27 = tpu.matmul %25, %26, %cst_20 {dimension_numbers = #tpu.dot_dimension_numbers<[1], [0], [0], [1], [0, 0, 1, 1], [], []>} : vector<16x128xbf16>, vector<128x8xbf16>, vector<16x8xf32> -> vector<16x8xf32>
    %c0_21 = arith.constant 0 : index
    %c0_22 = arith.constant 0 : index
    %28 = vector.load %arg9[%c0_21, %c0_22] : memref<1x8xf32, #tpu.memory_space<vmem>>, vector<1x8xf32>
    %29 = vector.broadcast %28 : vector<1x8xf32> to vector<16x8xf32>
    %30 = arith.addf %27, %29 : vector<16x8xf32>
    %cst_23 = arith.constant dense<0xFF800000> : vector<16xf32>
    %31 = vector.multi_reduction <maximumf>, %30, %cst_23 [1] : vector<16x8xf32> to vector<16xf32>
    %32 = vector.shape_cast %31 : vector<16xf32> to vector<16x1xf32>
    %33 = vector.broadcast %32 : vector<16x1xf32> to vector<16x8xf32>
    %34 = arith.subf %30, %33 : vector<16x8xf32>
    %35 = math.exp %34 : vector<16x8xf32>
    %cst_24 = arith.constant dense<0.000000e+00> : vector<16xf32>
    %36 = vector.multi_reduction <add>, %35, %cst_24 [1] : vector<16x8xf32> to vector<16xf32>
    %37 = vector.shape_cast %36 : vector<16xf32> to vector<16x1xf32>
    %38 = vector.broadcast %37 : vector<16x1xf32> to vector<16x8xf32>
    %39 = arith.divf %35, %38 : vector<16x8xf32>
    %c0_25 = arith.constant 0 : index
    %c0_26 = arith.constant 0 : index
    %40 = vector.load %arg10[%c0_25, %c0_26] : memref<16x8xf32, #tpu.memory_space<vmem>>, vector<16x8xf32>
    tpu.vector_store %arg10[%c0_25, %c0_26], %39 {strides = array<i32>} : memref<16x8xf32, #tpu.memory_space<vmem>>, vector<16x8xf32>,
    return
  }
  func.func @transform_0(%arg0: i32) -> (i32, i32) {
    %c0_i32 = arith.constant 0 : i32
    %c0_i32_0 = arith.constant 0 : i32
    return %arg0, %c0_i32 : i32, i32
  }
  func.func @transform_1(%arg0: i32) -> (i32, i32) {
    %c0_i32 = arith.constant 0 : i32
    %c0_i32_0 = arith.constant 0 : i32
    %c0_i32_1 = arith.constant 0 : i32
    return %c0_i32, %c0_i32_0 : i32, i32
  }
  func.func @transform_2(%arg0: i32) -> (i32, i32) {
    %c0_i32 = arith.constant 0 : i32
    %c0_i32_0 = arith.constant 0 : i32
    %c0_i32_1 = arith.constant 0 : i32
    return %c0_i32, %c0_i32_0 : i32, i32
  }
  func.func @transform_3(%arg0: i32) -> (i32, i32) {
    %c0_i32 = arith.constant 0 : i32
    %c0_i32_0 = arith.constant 0 : i32
    %c0_i32_1 = arith.constant 0 : i32
    return %c0_i32, %c0_i32_0 : i32, i32
  }
  func.func @transform_4(%arg0: i32) -> (i32, i32) {
    %c0_i32 = arith.constant 0 : i32
    %c0_i32_0 = arith.constant 0 : i32
    %c0_i32_1 = arith.constant 0 : i32
    return %c0_i32, %c0_i32_0 : i32, i32
  }
  func.func @transform_5(%arg0: i32) -> (i32, i32) {
    %c0_i32 = arith.constant 0 : i32
    %c0_i32_0 = arith.constant 0 : i32
    %c0_i32_1 = arith.constant 0 : i32
    return %c0_i32, %c0_i32_0 : i32, i32
  }
  func.func @transform_6(%arg0: i32) -> (i32, i32) {
    %c0_i32 = arith.constant 0 : i32
    %c0_i32_0 = arith.constant 0 : i32
    %c0_i32_1 = arith.constant 0 : i32
    return %c0_i32, %c0_i32_0 : i32, i32
  }
  func.func @transform_7(%arg0: i32) -> (i32, i32) {
    %c0_i32 = arith.constant 0 : i32
    %c0_i32_0 = arith.constant 0 : i32
    %c0_i32_1 = arith.constant 0 : i32
    return %c0_i32, %c0_i32_0 : i32, i32
  }
  func.func @transform_8(%arg0: i32) -> (i32, i32) {
    %c0_i32 = arith.constant 0 : i32
    %c0_i32_0 = arith.constant 0 : i32
    %c0_i32_1 = arith.constant 0 : i32
    return %c0_i32, %c0_i32_0 : i32, i32
  }
  func.func @transform_9(%arg0: i32) -> (i32, i32) {
    %c0_i32 = arith.constant 0 : i32
    %c0_i32_0 = arith.constant 0 : i32
    return %arg0, %c0_i32 : i32, i32
  }
}

</mosaic_0001>

<bundles_post_ra>
// kernel: tpu_custom_call.1
= control target key start
LH: loop header
LB: loop body
LE: loop exit
PB: predicated region body
PF: predicated region fallthrough
CT: control target
= control target key end

     0   :  { %14 = vsyncpa [#allocation3], 0  ;;  %s904_s0 = inlined_call_operand.hbm [shape: f32[16,16], index: 0, kind: input, shape index: {}]   ;;  %s905_s1 = inlined_call_operand.vmem [shape: bf16[16,128], index: 1, kind: input, shape index: {}]   ;;  %s906_s2 = inlined_call_operand.vmem [shape: f32[1,128], index: 2, kind: input, shape index: {}]   ;;  %s907_s3 = inlined_call_operand.vmem [shape: bf16[128,128], index: 3, kind: input, shape index: {}]   ;;  %s908_s4 = inlined_call_operand.vmem [shape: f32[1,128], index: 4, kind: input, shape index: {}]   ;;  %s909_s5 = inlined_call_operand.hbm [shape: bf16[128,128], index: 5, kind: input, shape index: {}]   ;;  %s910_s6 = inlined_call_operand.vmem [shape: f32[1,128], index: 6, kind: input, shape index: {}]   ;;  %s911_s7 = inlined_call_operand.vmem [shape: bf16[128,8], index: 7, kind: input, shape index: {}]   ;;  %s912_s8 = inlined_call_operand.vmem [shape: f32[1,8], index: 8, kind: input, shape index: {}]   ;;  %s913_s9 = inlined_call_operand.vmem [shape: f32[16,8], index: 9, kind: output, shape index: {}]  }
   0x1   :  { %15 = vsyncpa [#allocation5], 0  ;;  %s714_s30 = smov [#allocation2]   ;;  %s666_s13 = scalar_lea.hbm %s904_s0, 256 }
   0x2   :  { %s21_s10 = sshll.u32 %s714_s30, 4  ;;  %p667_p0 = scmp.ne.s32.totalorder %s904_s0, %s666_s13  ;;  %s22_s10 = int_to_ptr.vmem [resolvable:$true] %s21_s10 }
   0x3   :  { %p670_p1 = scmp.lt.u32.totalorder %s666_s13, %s904_s0 }
   0x5   :  { %p672_p2 = pnand %p670_p1, %p667_p0 }
   0x7   :  { %675 = shalt.err (!%p672_p2)
}
   0x8   :  { %s676_s18 = scalar_lea.vmem %s22_s10, 256  ;;  %p681_p4 = scmp.lt.s32.totalorder %s22_s10, %s22_s10 }
   0x9   :  { %p677_p3 = scmp.ne.s32.totalorder %s22_s10, %s676_s18  ;;  %p682_p5 = scmp.lt.s32.totalorder %s676_s18, %s676_s18 }
   0xb   :  { %p683_p6 = por %p682_p5, %p681_p4 }
   0xd   :  { %p684_p7 = pnand %p683_p6, %p677_p3 }
   0xf   :  { %687 = shalt.err (!%p684_p7)
}
  0x10   :  { %s715_s19 = smov 128   ;;  %s716_s20 = smov 8  }
  0x11   :  { %27 = dma.hbm_to_vmem [thread:$0]  %s904_s0, 256, %s22_s10, [#allocation3], %s715_s19, %s715_s19, %s716_s20  }
  0x12   :  { %s717_s23 = smov [#allocation4]   ;;  %s688_s27 = scalar_lea.hbm %s909_s5, 1024 }
  0x13   :  { %s41_s24 = sshll.u32 %s717_s23, 4  ;;  %p689_p8 = scmp.ne.s32.totalorder %s909_s5, %s688_s27  ;;  %s42_s24 = int_to_ptr.vmem [resolvable:$true] %s41_s24 }
  0x14   :  { %p692_p9 = scmp.lt.u32.totalorder %s688_s27, %s909_s5 }
  0x16   :  { %p694_p10 = pnand %p692_p9, %p689_p8 }
  0x18   :  { %697 = shalt.err (!%p694_p10)
}
  0x19   :  { %s698_s12 = scalar_lea.vmem %s42_s24, 1024  ;;  %p703_p12 = scmp.lt.s32.totalorder %s42_s24, %s42_s24 }
  0x1a   :  { %p699_p11 = scmp.ne.s32.totalorder %s42_s24, %s698_s12  ;;  %p704_p13 = scmp.lt.s32.totalorder %s698_s12, %s698_s12 }
  0x1c   :  { %p705_p0 = por %p704_p13, %p703_p12 }
  0x1e   :  { %p706_p1 = pnand %p705_p0, %p699_p11 }
  0x20   :  { %709 = shalt.err (!%p706_p1)
}
  0x21   :  { %s718_s0 = smov 64   ;;  %s719_s10 = smov 4  }
  0x22   :  { %47 = dma.hbm_to_vmem [thread:$0]  %s909_s5, 1024, %s42_s24, [#allocation5], %s718_s0, %s718_s0, %s719_s10  }
  0x23   :  { %710 = dma.done.wait [#allocation3], 256  }
  0x24   :  { %711 = vsyncadd [#allocation3], 4294967040 }
  0x25   :  { %712 = dma.done.wait [#allocation5], 1024  }
  0x26   :  { %713 = vsyncadd [#allocation5], 4294966272  ;;  %v720_v0 = vmov 0.0   ;;  %vm721_vm0 = vmmov 0   ;;  %v633_v1 = vld [vmem:[%s905_s1] sm:$0xff]   ;;  %v62_v3 = vld [vmem:[#allocation2 + $0x8] sm:$0xff] }
  0x27   :  { %559 = vmatprep.subr.bf16.mxu0 %v720_v0  ;;  %561 = vmatprep.mubr.msk.bf16.mxu0 %vm721_vm0, %v720_v0  ;;  %v61_v2 = vld [vmem:[#allocation2] sm:$0xff]  ;;  %vm79_vm1 = vcmask 130048   ;;  %v635_v6 = vld [vmem:[%s907_s3 + $0x8] sm:$0xff]   ;;  %v636_v7 = vld [vmem:[%s907_s3 + $0x10] sm:$0xff]   ;;  %vm469_vm2 = vcmask 64512  }
  0x28   :  { %565 = vmatprep.subr.bf16.mxu1 %v720_v0  ;;  %581 = vmatprep.mubr.msk.bf16.mxu1 %vm721_vm0, %v720_v0  ;;  %v63_v4 = vpack.c.bf16 %v62_v3, %v61_v2  ;;  %v634_v5 = vld [vmem:[%s907_s3] sm:$0xff]   ;;  %v637_v8 = vld [vmem:[%s907_s3 + $0x18] sm:$0xff]   ;;  %v639_v10 = vld [vmem:[%s907_s3 + $0x28] sm:$0xff]  }
  0x29   :  { %560 = vmatpush3.bf16.msra.mxu0 %v633_v1  ;;  %566 = vmatpush3.bf16.msra.mxu1 %v634_v5  ;;  %v638_v9 = vld [vmem:[%s907_s3 + $0x20] sm:$0xff]   ;;  %v640_v11 = vld [vmem:[%s907_s3 + $0x30] sm:$0xff]   ;;  %v641_v12 = vld [vmem:[%s907_s3 + $0x38] sm:$0xff]  }
  0x2a   :  { %585 = vmatprep.subr.bf16.mxu0 %v720_v0  ;;  %567 = vmatprep.subr.bf16.mxu1 %v720_v0  ;;  %v642_v13 = vld [vmem:[#allocation4] sm:$0xff]   ;;  %v643_v14 = vld [vmem:[#allocation4 + $0x8] sm:$0xff]   ;;  %v644_v15 = vld [vmem:[#allocation4 + $0x10] sm:$0xff]  }
  0x2b   :  { %v645_v16 = vld [vmem:[#allocation4 + $0x18] sm:$0xff]   ;;  %v646_v17 = vld [vmem:[#allocation4 + $0x20] sm:$0xff]   ;;  %v647_v18 = vld [vmem:[#allocation4 + $0x28] sm:$0xff]  }
  0x2c   :  { %562 = vmatmul.mubr.msk.bf16.vlgmr.msra.gmra.mrb[0].mxu0 %vm79_vm1, %v63_v4  ;;  %v500_v19 = vld [vmem:[%s906_s2] ss:$0 sm:$0xff]  ;;  %v649_v30 = vld [vmem:[#allocation4 + $0x38] sm:$0xff]   ;;  %v652_v33 = vld [vmem:[%s911_s7 + $0x10] sm:$0xff]  }
  0x2d   :  { %601 = vmatprep.mubr.msk.bf16.mxu0 %vm721_vm0, %v720_v0  ;;  %568 = vmatpush3.bf16.msra.mxu1 %v635_v6  ;;  %v648_v29 = vld [vmem:[#allocation4 + $0x30] sm:$0xff]   ;;  %v651_v32 = vld [vmem:[%s911_s7 + $0x8] sm:$0xff]   ;;  %v653_v34 = vld [vmem:[%s911_s7 + $0x18] sm:$0xff]  }
  0x2e   :  { %569 = vmatprep.subr.bf16.mxu1 %v720_v0  ;;  %586 = vmatpush3.bf16.msra.mxu0 %v642_v13  ;;  %v650_v31 = vld [vmem:[%s911_s7] sm:$0xff]   ;;  %v655_v36 = vld [vmem:[%s911_s7 + $0x28] sm:$0xff]   ;;  %v656_v47 = vld [vmem:[%s911_s7 + $0x30] sm:$0xff]  }
  0x2f   :  { %587 = vmatprep.subr.bf16.mxu0 %v720_v0  ;;  %v654_v35 = vld [vmem:[%s911_s7 + $0x20] sm:$0xff]   ;;  %v657_v48 = vld [vmem:[%s911_s7 + $0x38] sm:$0xff]  }
  0x30   :  { %v503_v37 = vld [vmem:[%s908_s4] ss:$0 sm:$0xff] }
  0x31   :  { %570 = vmatpush3.bf16.msra.mxu1 %v636_v7  ;;  %v512_v49 = vld [vmem:[%s910_s6] ss:$0 sm:$0xff] }
  0x32   :  { %571 = vmatprep.subr.bf16.mxu1 %v720_v0  ;;  %588 = vmatpush3.bf16.msra.mxu0 %v643_v14  ;;  %v521_v59 = vld [vmem:[%s912_s8] ss:$0 sm:$0xff] }
  0x33   :  { %589 = vmatprep.subr.bf16.mxu0 %v720_v0 }
  0x35   :  { %572 = vmatpush3.bf16.msra.mxu1 %v637_v8 }
  0x36   :  { %573 = vmatprep.subr.bf16.mxu1 %v720_v0  ;;  %590 = vmatpush3.bf16.msra.mxu0 %v644_v15 }
  0x37   :  { %591 = vmatprep.subr.bf16.mxu0 %v720_v0 }
  0x39   :  { %574 = vmatpush3.bf16.msra.mxu1 %v638_v9 }
  0x3a   :  { %575 = vmatprep.subr.bf16.mxu1 %v720_v0  ;;  %592 = vmatpush3.bf16.msra.mxu0 %v645_v16 }
  0x3b   :  { %593 = vmatprep.subr.bf16.mxu0 %v720_v0 }
  0x3d   :  { %576 = vmatpush3.bf16.msra.mxu1 %v639_v10 }
  0x3e   :  { %577 = vmatprep.subr.bf16.mxu1 %v720_v0  ;;  %594 = vmatpush3.bf16.msra.mxu0 %v646_v17 }
  0x3f   :  { %595 = vmatprep.subr.bf16.mxu0 %v720_v0 }
  0x41   :  { %578 = vmatpush3.bf16.msra.mxu1 %v640_v11 }
  0x42   :  { %579 = vmatprep.subr.bf16.mxu1 %v720_v0  ;;  %596 = vmatpush3.bf16.msra.mxu0 %v647_v18 }
  0x43   :  { %597 = vmatprep.subr.bf16.mxu0 %v720_v0 }
  0x45   :  { %580 = vmatpush3.bf16.msra.mxu1 %v641_v12 }
  0x46   :  { %605 = vmatprep.subr.bf16.mxu1 %v720_v0  ;;  %598 = vmatpush3.bf16.msra.mxu0 %v648_v29 }
  0x47   :  { %599 = vmatprep.subr.bf16.mxu0 %v720_v0 }
  0x4a   :  { %600 = vmatpush3.bf16.msra.mxu0 %v649_v30 }
  0xff   :  { %v117_v20 = vpop.f32.mrb[0].mxu0 }
 0x100   :  { %v118_v21 = vadd.f32 %v500_v19, %v117_v20  ;;  %v563_v22 = vpop.f32.mrb[1].mxu0 }
 0x101   :  { %v120_v23 = vpop.f32.mrb[2].mxu0 }
 0x102   :  { %v121_v24 = vadd.f32 %v500_v19, %v120_v23  ;;  %v564_v25 = vpop.f32.mrb[3].mxu0  ;;  %v124_v26 = vmax.f32 %v118_v21, 0.0 }
 0x104   :  { %v125_v27 = vmax.f32 %v121_v24, 0.0 }
 0x106   :  { %v126_v28 = vpack.c.bf16 %v125_v27, %v124_v26 }
 0x108   :  { %582 = vmatmul.mubr.bf16.vlgmr.msra.gmra.mrb[0].mxu1 %v126_v28 }
 0x109   :  { %621 = vmatprep.mubr.msk.bf16.mxu1 %vm721_vm0, %v720_v0  ;;  %606 = vmatpush3.bf16.msra.mxu1 %v650_v31 }
 0x10a   :  { %607 = vmatprep.subr.bf16.mxu1 %v720_v0 }
 0x10d   :  { %608 = vmatpush3.bf16.msra.mxu1 %v651_v32 }
 0x10e   :  { %609 = vmatprep.subr.bf16.mxu1 %v720_v0 }
 0x111   :  { %610 = vmatpush3.bf16.msra.mxu1 %v652_v33 }
 0x112   :  { %611 = vmatprep.subr.bf16.mxu1 %v720_v0 }
 0x115   :  { %612 = vmatpush3.bf16.msra.mxu1 %v653_v34 }
 0x116   :  { %613 = vmatprep.subr.bf16.mxu1 %v720_v0 }
 0x119   :  { %614 = vmatpush3.bf16.msra.mxu1 %v654_v35 }
 0x11a   :  { %615 = vmatprep.subr.bf16.mxu1 %v720_v0 }
 0x11d   :  { %616 = vmatpush3.bf16.msra.mxu1 %v655_v36 }
 0x11e   :  { %617 = vmatprep.subr.bf16.mxu1 %v720_v0 }
 0x121   :  { %618 = vmatpush3.bf16.msra.mxu1 %v656_v47 }
 0x122   :  { %619 = vmatprep.subr.bf16.mxu1 %v720_v0 }
 0x125   :  { %620 = vmatpush3.bf16.msra.mxu1 %v657_v48 }
 0x1db   :  { %v232_v38 = vpop.f32.mrb[0].mxu1 }
 0x1dc   :  { %v233_v39 = vadd.f32 %v503_v37, %v232_v38  ;;  %v583_v40 = vpop.f32.mrb[1].mxu1 }
 0x1dd   :  { %v235_v41 = vpop.f32.mrb[2].mxu1 }
 0x1de   :  { %v236_v42 = vadd.f32 %v503_v37, %v235_v41  ;;  %v584_v43 = vpop.f32.mrb[3].mxu1  ;;  %v239_v44 = vmax.f32 %v233_v39, 0.0 }
 0x1e0   :  { %v240_v45 = vmax.f32 %v236_v42, 0.0 }
 0x1e2   :  { %v241_v46 = vpack.c.bf16 %v240_v45, %v239_v44 }
 0x1e4   :  { %602 = vmatmul.mubr.bf16.vlgmr.msra.gmra.mrb[4].mxu0 %v241_v46 }
 0x2b7   :  { %v347_v50 = vpop.f32.mrb[4].mxu0 }
 0x2b8   :  { %v348_v51 = vadd.f32 %v512_v49, %v347_v50  ;;  %v603_v52 = vpop.f32.mrb[5].mxu0 }
 0x2b9   :  { %v350_v53 = vpop.f32.mrb[6].mxu0 }
 0x2ba   :  { %v351_v54 = vadd.f32 %v512_v49, %v350_v53  ;;  %v604_v55 = vpop.f32.mrb[7].mxu0  ;;  %v354_v56 = vmax.f32 %v348_v51, 0.0 }
 0x2bc   :  { %v355_v57 = vmax.f32 %v351_v54, 0.0 }
 0x2be   :  { %v356_v58 = vpack.c.bf16 %v355_v57, %v354_v56 }
 0x2c0   :  { %622 = vmatmul.mubr.bf16.vlgmr.msra.gmra.mrb[4].mxu1 %v356_v58 }
 0x393   :  { %v462_v60 = vpop.f32.mrb[4].mxu1 }
 0x394   :  { %v463_v61 = vadd.f32 %v521_v59, %v462_v60  ;;  %v623_v62 = vpop.f32.mrb[5].mxu1 }
 0x395   :  { %v465_v63 = vpop.f32.mrb[6].mxu1 }
 0x396   :  { %v466_v0 = vadd.f32 %v521_v59, %v465_v63  ;;  %v624_v1 = vpop.f32.mrb[7].mxu1  ;;  %v470_v2 = vsel %vm469_vm2, %v463_v61, -inf }
 0x397   :  { %471 = vmax.xlane.f32.xlu0 %v470_v2 }
 0x398   :  { %v473_v3 = vsel %vm469_vm2, %v466_v0, -inf }
 0x39b   :  { %474 = vmax.xlane.f32.xlu0 %v473_v3 }
 0x424   :  { %v472_v4 = vpop.xlane.xlu0 %471 }
 0x425   :  { %v476_v5 = vsub.f32 %v463_v61, %v472_v4 }
 0x427   :  { %v478_v6 = vmul.f32 1.442695, %v476_v5 }
 0x428   :  { %v475_v7 = vpop.xlane.xlu0 %474 }
 0x429   :  { %658 = vpow2.f32 %v478_v6  ;;  %v477_v8 = vsub.f32 %v466_v0, %v475_v7 }
 0x42b   :  { %v480_v9 = vmul.f32 1.442695, %v477_v8 }
 0x42d   :  { %660 = vpow2.f32 %v480_v9 }
 0x433   :  { %v659_v10 = vpop.eup %658 }
 0x434   :  { %v482_v11 = vsel %vm469_vm2, %v659_v10, 0.0 }
 0x435   :  { %483 = vadd.xlane.f32.xlu1 %v482_v11 }
 0x437   :  { %v661_v12 = vpop.eup %660 }
 0x438   :  { %v485_v13 = vsel %vm469_vm2, %v661_v12, 0.0 }
 0x439   :  { %486 = vadd.xlane.f32.xlu1 %v485_v13 }
 0x4c2   :  { %v484_v14 = vpop.xlane.xlu1 %483 }
 0x4c3   :  { %662 = vrcp.f32 %v484_v14 }
 0x4c6   :  { %v487_v15 = vpop.xlane.xlu1 %486 }
 0x4c7   :  { %664 = vrcp.f32 %v487_v15 }
 0x4cd   :  { %v663_v16 = vpop.eup %662 }
 0x4ce   :  { %v489_v17 = vmul.f32 %v663_v16, %v659_v10 }
 0x4d0   :  { %492 = vst.msk [vmem:[%s913_s9] sm:$0xff] %vm469_vm2, %v489_v17 }
 0x4d1   :  { %v665_v18 = vpop.eup %664 }
 0x4d2   :  { %v491_v19 = vmul.f32 %v665_v18, %v661_v12 }
 0x4d4   :  { %493 = vst.msk [vmem:[%s913_s9 + $0x8] sm:$0xff] %vm469_vm2, %v491_v19 }
 0x4d5   :  { %498 = vsyncpa [#allocation3], 1 }
 0x4d6   :  { %499 = vsyncpa [#allocation5], 1 }

</bundles_post_ra>
